<compile_context>
chip_gen: v7x
topology: tpu7x:2x2x1
jax: 0.10.0
libtpu: 0.0.40
codegen_flags: <defaults>
</compile_context>

<pallas_src>
import functools

import jax
import jax.numpy as jnp
from jax import lax
from jax.experimental import pallas as pl
from jax.experimental.pallas import tpu as pltpu

HIDDEN_PAD = 128   # hidden dim padded 50 -> 128 (lane-full)
OUT_PAD = 128      # output dim padded 2 -> 128 (lane-dense stores)


def _round_up(x, m):
    return ((x + m - 1) // m) * m


# ---------------------------------------------------------------------------
# Kernels
# ---------------------------------------------------------------------------
def _ode_func_kernel(y_ref, w1_ref, b1_ref, w2_ref, b2_ref, o_ref):
    """One evaluation of f(t, y) = tanh(y @ W1 + b1) @ W2 + b2 on a batch tile."""
    y = y_ref[...].astype(jnp.float32)                 # (TB, 2)
    w1 = w1_ref[...]                                   # (2, HP)
    # First layer: K=2 contraction as two VPU broadcast-FMAs (skip the MXU).
    pre = y[:, 0:1] * w1[0:1, :] + y[:, 1:2] * w1[1:2, :] + b1_ref[...]
    h = jnp.tanh(pre)                                  # (TB, HP)  -- EUP tanh
    # Second layer: clean lane-dense (TB, HP) @ (HP, OP) MXU tile.
    out = jnp.dot(h, w2_ref[...], preferred_element_type=jnp.float32) + b2_ref[...]
    o_ref[...] = out.astype(o_ref.dtype)


def _ode_euler_kernel(y_ref, w1_ref, b1_ref, w2_ref, b2_ref, o_ref, *,
                      num_steps, dt):
    """Fused explicit-Euler integrator: y_{k+1} = y_k + dt * f(y_k).

    The lane-padded state tile lives in VMEM/vregs across all steps; weight
    loads and bias broadcasts are hoisted out of the loop (JAX does not CSE
    broadcast_in_dim).
    """
    tb = y_ref.shape[0]
    hp = w1_ref.shape[1]
    op = w2_ref.shape[1]

    w1 = w1_ref[...]                                   # (2, HP)
    w1r0 = w1[0:1, :]
    w1r1 = w1[1:2, :]
    w2 = w2_ref[...]                                   # (HP, OP)
    b1 = jnp.broadcast_to(b1_ref[...], (tb, hp))       # hoisted broadcasts
    b2 = jnp.broadcast_to(b2_ref[...], (tb, op))

    def step(_, y):
        h = jnp.tanh(y[:, 0:1] * w1r0 + y[:, 1:2] * w1r1 + b1)
        f = jnp.dot(h, w2, preferred_element_type=jnp.float32) + b2
        # Padded lanes of f are exactly zero, so the state stays zero there.
        return y + dt * f

    y = lax.fori_loop(0, num_steps, step, y_ref[...].astype(jnp.float32))
    o_ref[...] = y.astype(o_ref.dtype)


# ---------------------------------------------------------------------------
# Wrappers
# ---------------------------------------------------------------------------
def _pad_params(params):
    """Zero-pad hidden -> HIDDEN_PAD and out -> OUT_PAD (mathematical no-op)."""
    w1, b1, w2, b2 = params                            # (2,H),(1,H),(H,2),(1,2)
    hidden = w1.shape[1]
    out_dim = w2.shape[1]
    w1p = jnp.pad(w1, ((0, 0), (0, HIDDEN_PAD - hidden)))
    b1p = jnp.pad(b1, ((0, 0), (0, HIDDEN_PAD - hidden)))
    w2p = jnp.pad(w2, ((0, HIDDEN_PAD - hidden), (0, OUT_PAD - out_dim)))
    b2p = jnp.pad(b2, ((0, 0), (0, OUT_PAD - out_dim)))
    return w1p, b1p, w2p, b2p


def _batch_tiling(batch, block_b):
    tb = min(block_b, _round_up(batch, 8))
    return tb, _round_up(batch, tb)


_COMPILER_PARAMS = pltpu.CompilerParams(
    dimension_semantics=("parallel",),        # shard batch tiles across TCs (v7x)
    vmem_limit_bytes=32 * 1024 * 1024,        # explicit budget (v5e default 16 MiB)
)


def linear_ode_func(t, y, params, *, block_b=256):
    """Pallas equivalent of LinearODEFunc.forward(t, y). `t` is unused."""
    del t
    w1p, b1p, w2p, b2p = _pad_params(params)
    in_dim = w1p.shape[0]
    out_dim = params[2].shape[1]
    batch, feat = y.shape

    tb, bp = _batch_tiling(batch, block_b)
    y_p = jnp.pad(y, ((0, bp - batch), (0, 0))) if bp != batch else y

    out = pl.pallas_call(
        _ode_func_kernel,
        out_shape=jax.ShapeDtypeStruct((bp, OUT_PAD), y.dtype),
        grid=(bp // tb,),
        in_specs=[
            pl.BlockSpec((tb, feat), lambda i: (i, 0)),             # streamed y tile
            pl.BlockSpec((in_dim, HIDDEN_PAD), lambda i: (0, 0)),   # resident weights
            pl.BlockSpec((1, HIDDEN_PAD), lambda i: (0, 0)),
            pl.BlockSpec((HIDDEN_PAD, OUT_PAD), lambda i: (0, 0)),
            pl.BlockSpec((1, OUT_PAD), lambda i: (0, 0)),
        ],
        out_specs=pl.BlockSpec((tb, OUT_PAD), lambda i: (i, 0)),    # lane-dense slab
        compiler_params=_COMPILER_PARAMS,
    )(y_p, w1p, b1p, w2p, b2p)
    return out[:batch, :out_dim]


def linear_ode_integrate(y0, params, *, dt=0.1, num_steps=16, block_b=128):
    """Fused explicit-Euler rollout of dy/dt = net(y) inside ONE pallas_call."""
    w1p, b1p, w2p, b2p = _pad_params(params)
    in_dim = w1p.shape[0]
    out_dim = params[2].shape[1]
    batch, feat = y0.shape

    tb, bp = _batch_tiling(batch, block_b)
    # Lane-pad the state once in the wrapper: (B, 2) -> (Bp, OUT_PAD).
    y_p = jnp.pad(y0, ((0, bp - batch), (0, OUT_PAD - feat)))

    kernel = functools.partial(_ode_euler_kernel,
                               num_steps=int(num_steps), dt=float(dt))
    out = pl.pallas_call(
        kernel,
        out_shape=jax.ShapeDtypeStruct((bp, OUT_PAD), y0.dtype),
        grid=(bp // tb,),
        in_specs=[
            pl.BlockSpec((tb, OUT_PAD), lambda i: (i, 0)),
            pl.BlockSpec((in_dim, HIDDEN_PAD), lambda i: (0, 0)),
            pl.BlockSpec((1, HIDDEN_PAD), lambda i: (0, 0)),
            pl.BlockSpec((HIDDEN_PAD, OUT_PAD), lambda i: (0, 0)),
            pl.BlockSpec((1, OUT_PAD), lambda i: (0, 0)),
        ],
        out_specs=pl.BlockSpec((tb, OUT_PAD), lambda i: (i, 0)),
        compiler_params=_COMPILER_PARAMS,
    )(y_p, w1p, b1p, w2p, b2p)
    return out[:batch, :out_dim]


# ---------------------------------------------------------------------------
# Init + pure-JAX references
# ---------------------------------------------------------------------------
def init_params(key, in_dim=2, hidden=50, out_dim=2, dtype=jnp.float32):
    """Matches nn.init.normal_(std=0.1) weights / zero biases.
    Weights stored transposed as (in, out); biases as (1, out) rows."""
    k1, k2 = jax.random.split(key)
    w1 = (0.1 * jax.random.normal(k1, (in_dim, hidden))).astype(dtype)
    b1 = jnp.zeros((1, hidden), dtype)
    w2 = (0.1 * jax.random.normal(k2, (hidden, out_dim))).astype(dtype)
    b2 = jnp.zeros((1, out_dim), dtype)
    return (w1, b1, w2, b2)


def reference_forward(t, y, params):
    del t
    w1, b1, w2, b2 = params
    return jnp.tanh(y @ w1 + b1) @ w2 + b2


def reference_integrate(y0, params, dt, num_steps):
    y = y0
    for _ in range(num_steps):
        y = y + dt * reference_forward(None, y, params)
    return y


if __name__ == "__main__":
    key = jax.random.PRNGKey(0)
    kp, ky = jax.random.split(key)

    params = init_params(kp)
    batch = 8
    y = jax.random.normal(ky, (batch, 2), jnp.float32)
    t = jnp.float32(0.0)  # unused, kept for signature parity with the module

    # Single f(t, y) evaluation == LinearODEFunc.forward(t, y).
    out = jax.block_until_ready(linear_ode_func(t, y, params))
    ref = reference_forward(t, y, params)
    assert out.shape == (batch, 2), out.shape
    assert jnp.allclose(out, ref, atol=1e-5, rtol=1e-5), (out, ref)

    # Fused multi-step Euler rollout (solver loop fused into one kernel).
    dt, steps = 0.1, 16
    traj = jax.block_until_ready(
        linear_ode_integrate(y, params, dt=dt, num_steps=steps))
    traj_ref = reference_integrate(y, params, dt, steps)
    assert traj.shape == (batch, 2), traj.shape
    assert jnp.allclose(traj, traj_ref, atol=1e-4, rtol=1e-4), (traj, traj_ref)

    print("KERNEL_OK")
</pallas_src>

<mosaic_0001>
module attributes {stable_mosaic.version = 11 : i64} {
  func.func @_ode_func_kernel(%arg0: i32, %arg1: memref<8x2xf32, #tpu.memory_space<vmem>>, %arg2: memref<2x128xf32, #tpu.memory_space<vmem>>, %arg3: memref<1x128xf32, #tpu.memory_space<vmem>>, %arg4: memref<128x128xf32, #tpu.memory_space<vmem>>, %arg5: memref<1x128xf32, #tpu.memory_space<vmem>>, %arg6: memref<8x128xf32, #tpu.memory_space<vmem>>) attributes {dimension_semantics = [#tpu.dimension_semantics<parallel>], iteration_bounds = array<i64: 1>, scalar_prefetch = 0 : i64, scratch_operands = 0 : i64, tpu.core_type = #tpu.core_type<tc>, window_params = [{transform_indices = @transform_0, window_bounds = array<i64: 8, 2>}, {pipeline_mode = #tpu.pipeline_mode<synchronous>, transform_indices = @transform_1, window_bounds = array<i64: 2, 128>}, {pipeline_mode = #tpu.pipeline_mode<synchronous>, transform_indices = @transform_2, window_bounds = array<i64: 1, 128>}, {pipeline_mode = #tpu.pipeline_mode<synchronous>, transform_indices = @transform_3, window_bounds = array<i64: 128, 128>}, {pipeline_mode = #tpu.pipeline_mode<synchronous>, transform_indices = @transform_4, window_bounds = array<i64: 1, 128>}, {transform_indices = @transform_5, window_bounds = array<i64: 8, 128>}]} {
    %c0 = arith.constant 0 : index
    %c0_0 = arith.constant 0 : index
    %0 = vector.load %arg1[%c0, %c0_0] : memref<8x2xf32, #tpu.memory_space<vmem>>, vector<8x2xf32>
    %c0_1 = arith.constant 0 : index
    %c0_2 = arith.constant 0 : index
    %1 = vector.load %arg2[%c0_1, %c0_2] : memref<2x128xf32, #tpu.memory_space<vmem>>, vector<2x128xf32>
    %2 = vector.extract_strided_slice %0 {offsets = [0, 0], sizes = [8, 1], strides = [1, 1]} : vector<8x2xf32> to vector<8x1xf32>
    %3 = vector.extract_strided_slice %1 {offsets = [0, 0], sizes = [1, 128], strides = [1, 1]} : vector<2x128xf32> to vector<1x128xf32>
    %4 = vector.broadcast %2 : vector<8x1xf32> to vector<8x128xf32>
    %5 = vector.broadcast %3 : vector<1x128xf32> to vector<8x128xf32>
    %6 = arith.mulf %4, %5 : vector<8x128xf32>
    %7 = vector.extract_strided_slice %0 {offsets = [0, 1], sizes = [8, 1], strides = [1, 1]} : vector<8x2xf32> to vector<8x1xf32>
    %8 = vector.extract_strided_slice %1 {offsets = [1, 0], sizes = [1, 128], strides = [1, 1]} : vector<2x128xf32> to vector<1x128xf32>
    %9 = vector.broadcast %7 : vector<8x1xf32> to vector<8x128xf32>
    %10 = vector.broadcast %8 : vector<1x128xf32> to vector<8x128xf32>
    %11 = arith.mulf %9, %10 : vector<8x128xf32>
    %12 = arith.addf %6, %11 : vector<8x128xf32>
    %c0_3 = arith.constant 0 : index
    %c0_4 = arith.constant 0 : index
    %13 = vector.load %arg3[%c0_3, %c0_4] : memref<1x128xf32, #tpu.memory_space<vmem>>, vector<1x128xf32>
    %14 = vector.broadcast %13 : vector<1x128xf32> to vector<8x128xf32>
    %15 = arith.addf %12, %14 : vector<8x128xf32>
    %16 = math.tanh %15 : vector<8x128xf32>
    %c0_5 = arith.constant 0 : index
    %c0_6 = arith.constant 0 : index
    %17 = vector.load %arg4[%c0_5, %c0_6] : memref<128x128xf32, #tpu.memory_space<vmem>>, vector<128x128xf32>
    %cst = arith.constant dense<0.000000e+00> : vector<8x128xf32>
    %18 = tpu.matmul %16, %17, %cst {dimension_numbers = #tpu.dot_dimension_numbers<[1], [0], [0], [1], [0, 0, 1, 1], [], []>} : vector<8x128xf32>, vector<128x128xf32>, vector<8x128xf32> -> vector<8x128xf32>
    %c0_7 = arith.constant 0 : index
    %c0_8 = arith.constant 0 : index
    %19 = vector.load %arg5[%c0_7, %c0_8] : memref<1x128xf32, #tpu.memory_space<vmem>>, vector<1x128xf32>
    %20 = vector.broadcast %19 : vector<1x128xf32> to vector<8x128xf32>
    %21 = arith.addf %18, %20 : vector<8x128xf32>
    %c0_9 = arith.constant 0 : index
    %c0_10 = arith.constant 0 : index
    %22 = vector.load %arg6[%c0_9, %c0_10] : memref<8x128xf32, #tpu.memory_space<vmem>>, vector<8x128xf32>
    tpu.vector_store %arg6[%c0_9, %c0_10], %21 {strides = array<i32>} : memref<8x128xf32, #tpu.memory_space<vmem>>, vector<8x128xf32>,
    return
  }
  func.func @transform_0(%arg0: i32) -> (i32, i32) {
    %c0_i32 = arith.constant 0 : i32
    %c0_i32_0 = arith.constant 0 : i32
    return %arg0, %c0_i32 : i32, i32
  }
  func.func @transform_1(%arg0: i32) -> (i32, i32) {
    %c0_i32 = arith.constant 0 : i32
    %c0_i32_0 = arith.constant 0 : i32
    %c0_i32_1 = arith.constant 0 : i32
    return %c0_i32, %c0_i32_0 : i32, i32
  }
  func.func @transform_2(%arg0: i32) -> (i32, i32) {
    %c0_i32 = arith.constant 0 : i32
    %c0_i32_0 = arith.constant 0 : i32
    %c0_i32_1 = arith.constant 0 : i32
    return %c0_i32, %c0_i32_0 : i32, i32
  }
  func.func @transform_3(%arg0: i32) -> (i32, i32) {
    %c0_i32 = arith.constant 0 : i32
    %c0_i32_0 = arith.constant 0 : i32
    %c0_i32_1 = arith.constant 0 : i32
    return %c0_i32, %c0_i32_0 : i32, i32
  }
  func.func @transform_4(%arg0: i32) -> (i32, i32) {
    %c0_i32 = arith.constant 0 : i32
    %c0_i32_0 = arith.constant 0 : i32
    %c0_i32_1 = arith.constant 0 : i32
    return %c0_i32, %c0_i32_0 : i32, i32
  }
  func.func @transform_5(%arg0: i32) -> (i32, i32) {
    %c0_i32 = arith.constant 0 : i32
    %c0_i32_0 = arith.constant 0 : i32
    return %arg0, %c0_i32 : i32, i32
  }
}

</mosaic_0001>

<bundles_post_ra>
// kernel: tpu_custom_call.1
= control target key start
LH: loop header
LB: loop body
LE: loop exit
PB: predicated region body
PF: predicated region fallthrough
CT: control target
= control target key end

     0   :  { %10 = vsyncpa [#allocation3], 0  ;;  %s389_s0 = inlined_call_operand.vmem [shape: f32[8,2], index: 0, kind: input, shape index: {}]   ;;  %s390_s1 = inlined_call_operand.vmem [shape: f32[2,128], index: 1, kind: input, shape index: {}]   ;;  %s391_s2 = inlined_call_operand.vmem [shape: f32[1,128], index: 2, kind: input, shape index: {}]   ;;  %s392_s3 = inlined_call_operand.hbm [shape: f32[128,128], index: 3, kind: input, shape index: {}]   ;;  %s393_s4 = inlined_call_operand.vmem [shape: f32[1,128], index: 4, kind: input, shape index: {}]   ;;  %s394_s5 = inlined_call_operand.hbm [shape: f32[8,128], index: 5, kind: output, shape index: {}]  }
   0x1   :  { %11 = vsyncpa [#allocation4], 0  ;;  %s314_s18 = smov [#allocation2]   ;;  %s266_s22 = scalar_lea.hbm %s392_s3, 2048 }
   0x2   :  { %s23_s19 = sshll.u32 %s314_s18, 4  ;;  %p267_p0 = scmp.ne.s32.totalorder %s392_s3, %s266_s22  ;;  %s24_s19 = int_to_ptr.vmem [resolvable:$true] %s23_s19 }
   0x3   :  { %p270_p1 = scmp.lt.u32.totalorder %s266_s22, %s392_s3 }
   0x5   :  { %p272_p2 = pnand %p270_p1, %p267_p0 }
   0x7   :  { %275 = shalt.err (!%p272_p2)
}
   0x8   :  { %s276_s27 = scalar_lea.vmem %s24_s19, 2048  ;;  %p281_p4 = scmp.lt.s32.totalorder %s24_s19, %s24_s19 }
   0x9   :  { %p277_p3 = scmp.ne.s32.totalorder %s24_s19, %s276_s27  ;;  %p282_p5 = scmp.lt.s32.totalorder %s276_s27, %s276_s27 }
   0xb   :  { %p283_p6 = por %p282_p5, %p281_p4 }
   0xd   :  { %p284_p7 = pnand %p283_p6, %p277_p3 }
   0xf   :  { %287 = shalt.err (!%p284_p7)
}
  0x10   :  { %s315_s28 = smov 128   ;;  %s316_s29 = smov 8  }
  0x11   :  { %29 = dma.hbm_to_vmem [thread:$0]  %s392_s3, 2048, %s24_s19, [#allocation3], %s315_s28, %s315_s28, %s316_s29  }
  0x12   :  { %310 = dma.done.wait [#allocation3], 2048  }
  0x13   :  { %311 = vsyncadd [#allocation3], 4294965248  ;;  %v317_v0 = vmov 0   ;;  %v318_v1 = vmov 0.0|0.0   ;;  %v35_v2 = vld [vmem:[%s389_s0] sm:$0xff]  ;;  %v67_v4 = vld [vmem:[#allocation2 + $0x8] sm:$0xff]  ;;  %v42_v29 = vlaneseq }
  0x14   :  { %262 = vset.pattern.permute.xlu0 %v317_v0  ;;  %229 = vmatprep.subr.bf16.mxu0 %v318_v1  ;;  %v66_v3 = vld [vmem:[#allocation2] sm:$0xff]  ;;  %v68_v6 = vld [vmem:[#allocation2 + $0x10] sm:$0xff]  ;;  %v69_v7 = vld [vmem:[#allocation2 + $0x18] sm:$0xff]  ;;  %v319_v11 = vmov 1   ;;  %vm320_vm0 = vmmov 0   ;;  %v321_v18 = vmov 0.0  }
  0x15   :  { %39 = vperm.xlu0 %262, %v35_v2   ;;  %v230_v5 = vpack.c.bf16 %v67_v4, %v66_v3  ;;  %v233_v8 = vpack.c.bf16 %v69_v7, %v68_v6  ;;  %v70_v9 = vld [vmem:[#allocation2 + $0x20] sm:$0xff]  ;;  %v71_v10 = vld [vmem:[#allocation2 + $0x28] sm:$0xff]  ;;  %v72_v13 = vld [vmem:[#allocation2 + $0x30] sm:$0xff]  ;;  %226 = vmatprep.mubr.msk.f32.mxu0 %vm320_vm0, %v321_v18  ;;  %v43_v30 = vshrl.u32 %v42_v29, 7 }
  0x16   :  { %v236_v12 = vpack.c.bf16 %v71_v10, %v70_v9  ;;  %v73_v14 = vld [vmem:[#allocation2 + $0x38] sm:$0xff]  ;;  %v74_v16 = vld [vmem:[#allocation2 + $0x40] sm:$0xff]  ;;  %v75_v17 = vld [vmem:[#allocation2 + $0x48] sm:$0xff] }
  0x17   :  { %231 = vmatpush3.bf16.msra.mxu0 %v230_v5  ;;  %v239_v15 = vpack.c.bf16 %v73_v14, %v72_v13  ;;  %v242_v19 = vpack.c.bf16 %v75_v17, %v74_v16  ;;  %v76_v20 = vld [vmem:[#allocation2 + $0x50] sm:$0xff]  ;;  %v77_v21 = vld [vmem:[#allocation2 + $0x58] sm:$0xff]  ;;  %v78_v23 = vld [vmem:[#allocation2 + $0x60] sm:$0xff]  ;;  %v44_v31 = vsub.s32 0, %v43_v30  ;;  %v53_v32 = vsub.s32 1, %v43_v30 }
  0x18   :  { %232 = vmatprep.subr.bf16.mxu0 %v318_v1  ;;  %v245_v22 = vpack.c.bf16 %v77_v21, %v76_v20  ;;  %v79_v24 = vld [vmem:[#allocation2 + $0x68] sm:$0xff]  ;;  %v80_v26 = vld [vmem:[#allocation2 + $0x70] sm:$0xff]  ;;  %v81_v27 = vld [vmem:[#allocation2 + $0x78] sm:$0xff] }
  0x19   :  { %263 = vset.pattern.permute.xlu0 %v319_v11  ;;  %v248_v25 = vpack.c.bf16 %v79_v24, %v78_v23  ;;  %v251_v28 = vpack.c.bf16 %v81_v27, %v80_v26  ;;  %v36_v33 = vld [vmem:[%s390_s1] sm:$0x3]  ;;  %s322_s1 = smov [#allocation5]  }
  0x1a   :  { %48 = vperm.xlu0 %263, %v35_v2   ;;  %v45_v35 = vrot.slane %v36_v33, %v44_v31  ;;  %v54_v36 = vrot.slane %v36_v33, %v53_v32  ;;  %v175_v40 = vld [vmem:[%s391_s2] ss:$0 sm:$0xff]  ;;  %s166_s13 = sshll.u32 %s322_s1, 4  ;;  %s167_s13 = int_to_ptr.vmem [resolvable:$true] %s166_s13 }
  0x1b   :  { %234 = vmatpush3.bf16.msra.mxu0 %v233_v8  ;;  %v176_v44 = vld [vmem:[%s393_s4] ss:$0 sm:$0xff]  ;;  %s288_s14 = scalar_lea.vmem %s167_s13, 128  ;;  %p293_p9 = scmp.lt.s32.totalorder %s167_s13, %s167_s13 }
  0x1c   :  { %235 = vmatprep.subr.bf16.mxu0 %v318_v1  ;;  %p289_p8 = scmp.ne.s32.totalorder %s167_s13, %s288_s14  ;;  %p294_p10 = scmp.lt.s32.totalorder %s288_s14, %s288_s14 }
  0x1e   :  { %p295_p11 = por %p294_p10, %p293_p9 }
  0x1f   :  { %237 = vmatpush3.bf16.msra.mxu0 %v236_v12 }
  0x20   :  { %238 = vmatprep.subr.bf16.mxu0 %v318_v1  ;;  %p296_p12 = pnand %p295_p11, %p289_p8 }
  0x23   :  { %240 = vmatpush3.bf16.msra.mxu0 %v239_v15 }
  0x24   :  { %241 = vmatprep.subr.bf16.mxu0 %v318_v1 }
  0x27   :  { %243 = vmatpush3.bf16.msra.mxu0 %v242_v19 }
  0x28   :  { %244 = vmatprep.subr.bf16.mxu0 %v318_v1 }
  0x2b   :  { %246 = vmatpush3.bf16.msra.mxu0 %v245_v22 }
  0x2c   :  { %247 = vmatprep.subr.bf16.mxu0 %v318_v1 }
  0x2f   :  { %249 = vmatpush3.bf16.msra.mxu0 %v248_v25 }
  0x30   :  { %250 = vmatprep.subr.bf16.mxu0 %v318_v1 }
  0x33   :  { %252 = vmatpush3.bf16.msra.mxu0 %v251_v28 }
  0x94   :  { %v40_v34 = vpop.permute.xlu0 %39 }
  0x95   :  { %v46_v38 = vmul.f32 %v45_v35, %v40_v34 }
  0x99   :  { %v49_v37 = vpop.permute.xlu0 %48 }
  0x9a   :  { %v55_v39 = vmul.f32 %v54_v36, %v49_v37 }
  0x9c   :  { %v56_v41 = vadd.f32 %v55_v39, %v46_v38 }
  0x9e   :  { %v64_v42 = vadd.f32 %v175_v40, %v56_v41 }
  0xa0   :  { %264 = vtanh.f32 %v64_v42 }
  0xaa   :  { %v265_v43 = vpop.eup %264 }
  0xab   :  { %227 = vmatmul.mubr.f32.vlgmr.msra.gmra.mrb[0].mxu0 %v265_v43 }
 0x17e   :  { %v155_v45 = vpop.f32.mrb[0].mxu0 }
 0x17f   :  { %v156_v46 = vadd.f32 %v176_v44, %v155_v45  ;;  %v228_v47 = vpop.f32.mrb[1].mxu0 }
 0x181   :  { %159 = vst [vmem:[#allocation5] sm:$0xff] %v156_v46 }
 0x182   :  { %299 = shalt.err (!%p296_p12)
}
 0x183   :  { %s300_s16 = scalar_lea.hbm %s394_s5, 128 }
 0x184   :  { %p301_p13 = scmp.ne.s32.totalorder %s394_s5, %s300_s16  ;;  %p304_p0 = scmp.lt.u32.totalorder %s300_s16, %s394_s5 }
 0x186   :  { %p306_p1 = pnand %p304_p0, %p301_p13 }
 0x188   :  { %309 = shalt.err (!%p306_p1)
}
 0x189   :  { %169 = dma.vmem_to_hbm [thread:$0]  %s167_s13, 128, %s394_s5, [#allocation4]  }
 0x18a   :  { %312 = dma.done.wait [#allocation4], 128  }
 0x18b   :  { %313 = vsyncadd [#allocation4], 4294967168 }
 0x18c   :  { %173 = vsyncpa [#allocation3], 1 }
 0x18d   :  { %174 = vsyncpa [#allocation4], 1 }

</bundles_post_ra>
